<compile_context>
chip_gen: v5e
topology: v5e:2x2
jax: 0.10.0
libtpu: 0.0.40
codegen_flags: <defaults>
</compile_context>

<pallas_src>
import functools

import jax
import jax.numpy as jnp
import numpy as np
from jax import lax
from jax.experimental import pallas as pl
from jax.experimental.pallas import tpu as pltpu


def _cross_infer_kernel(x_ref, thw_ref, phw_ref, gw_ref, ww_ref, mask_ref,
                        newx_ref, stats_ref):
    """Per-batch spatio-temporal cross-attention + residual + BN partial stats."""
    xb = x_ref[0].astype(jnp.float32)                                    # (M, NFB)

    # Three small projections (one MXU pass each at these K/N); weights are
    # pre-transposed in the wrapper -> no in-kernel transpose / lane slicing.
    th = jnp.dot(xb, thw_ref[...], preferred_element_type=jnp.float32)   # (M, L)
    ph = jnp.dot(xb, phw_ref[...], preferred_element_type=jnp.float32)   # (M, L)
    gg = jnp.dot(xb, gw_ref[...], preferred_element_type=jnp.float32)    # (M, L)

    # gram[r, c] = <theta_r, phi_c>; contract the latent dim of BOTH operands so
    # phi feeds the MXU directly (no explicit transpose/relayout).
    gram = lax.dot_general(th, ph, (((1,), (1,)), ((), ())),
                           preferred_element_type=jnp.float32)            # (M, M)

    # Precomputed static mask: same-time -> 1/(N*(T+N)), same-node -> 1/(T*(T+N)).
    # Attention kept in f32 for accuracy (kernel is not MXU-bound here).
    attn = gram * mask_ref[...]                                          # (M, M)

    st = jnp.dot(attn, gg, preferred_element_type=jnp.float32)           # (M, L)
    newx = jnp.dot(st, ww_ref[...], preferred_element_type=jnp.float32) + xb

    newx_ref[0] = newx.astype(newx_ref.dtype)

    # Per-batch partial BatchNorm statistics: per-channel sum and sum-of-squares
    # in a single pass over newx.
    s = jnp.sum(newx, axis=0, keepdims=True)                             # (1, NFB)
    sq = jnp.sum(newx * newx, axis=0, keepdims=True)                     # (1, NFB)
    stats_ref[0] = jnp.concatenate([s, sq], axis=0)                      # (2, NFB)
    # TODO(synk): BatchNorm running_mean/running_var updates (training-mode side
    # effect) are not modeled; they do not affect this forward output.


def _bn_apply_kernel(newx_ref, stats_ref, gamma_ref, beta_ref, out_ref, *,
                     count, eps):
    """Finish training-mode BatchNorm2d: reduce partial stats, one FMA/element."""
    tot = jnp.sum(stats_ref[...].astype(jnp.float32), axis=0)            # (2, NFB)
    inv_count = 1.0 / count
    mean = tot[0:1, :] * inv_count                                       # (1, NFB)
    var = tot[1:2, :] * inv_count - mean * mean                          # biased
    scale = gamma_ref[...] * lax.rsqrt(var + eps)                        # (1, NFB)
    shift = beta_ref[...] - mean * scale                                 # (1, NFB)
    out_ref[0] = (newx_ref[0].astype(jnp.float32) * scale
                  + shift).astype(out_ref.dtype)


@functools.partial(jax.jit, static_argnames=("eps",))
def cross_infer_block(x, theta_w, phi_w, g_w, w_w, gamma, beta, eps=1e-5):
    B, T, N, NFB = x.shape
    L = theta_w.shape[0]
    M = T * N
    R = B * M

    x3d = x.reshape(B, M, NFB)
    thw = theta_w.T                          # (NFB, L)
    phw = phi_w.T                            # (NFB, L)
    gw = g_w.T                               # (NFB, L)
    ww = w_w.T                               # (L, NFB)
    gamma2d = gamma.reshape(1, NFB).astype(jnp.float32)
    beta2d = beta.reshape(1, NFB).astype(jnp.float32)

    # Static spatial/temporal attention mask (pure function of T, N) — built once
    # at trace time with numpy (constant-folded), reused for every batch block.
    ii = np.arange(M) // N                   # time index of each flat (i, j) row
    jj = np.arange(M) % N                    # node index of each flat (i, j) row
    field = float(T + N)
    mask_np = ((ii[:, None] == ii[None, :]).astype(np.float32) / (N * field)
               + (jj[:, None] == jj[None, :]).astype(np.float32) / (T * field))
    mask = jnp.asarray(mask_np, dtype=jnp.float32)

    vmem_limit = 32 * 1024 * 1024

    flops1 = int(B * (6 * M * NFB * L + 4 * M * M * L + M * M
                      + 2 * M * L * NFB + M * NFB))
    bytes1 = int(4 * (B * M * NFB + 4 * NFB * L + M * M
                      + B * M * NFB + B * 2 * NFB))
    newx, stats = pl.pallas_call(
        _cross_infer_kernel,
        out_shape=(jax.ShapeDtypeStruct((B, M, NFB), jnp.float32),
                   jax.ShapeDtypeStruct((B, 2, NFB), jnp.float32)),
        grid=(B,),
        in_specs=[
            pl.BlockSpec((1, M, NFB), lambda b: (b, 0, 0)),   # x (per-batch block)
            pl.BlockSpec((NFB, L), lambda b: (0, 0)),          # theta^T
            pl.BlockSpec((NFB, L), lambda b: (0, 0)),          # phi^T
            pl.BlockSpec((NFB, L), lambda b: (0, 0)),          # g^T
            pl.BlockSpec((L, NFB), lambda b: (0, 0)),          # W^T
            pl.BlockSpec((M, M), lambda b: (0, 0)),            # static mask
        ],
        out_specs=(pl.BlockSpec((1, M, NFB), lambda b: (b, 0, 0)),
                   pl.BlockSpec((1, 2, NFB), lambda b: (b, 0, 0))),
        compiler_params=pltpu.CompilerParams(
            dimension_semantics=("parallel",),
            vmem_limit_bytes=vmem_limit),
        cost_estimate=pl.CostEstimate(flops=flops1, transcendentals=0,
                                      bytes_accessed=bytes1),
    )(x3d, thw, phw, gw, ww, mask)

    flops2 = int(2 * B * M * NFB + 2 * B * NFB + 8 * NFB)
    bytes2 = int(4 * (2 * B * M * NFB + B * 2 * NFB + 2 * NFB))
    alias = {0: 0} if x.dtype == jnp.float32 else {}
    out = pl.pallas_call(
        functools.partial(_bn_apply_kernel, count=float(R), eps=float(eps)),
        out_shape=jax.ShapeDtypeStruct((B, M, NFB), x.dtype),
        grid=(B,),
        in_specs=[
            pl.BlockSpec((1, M, NFB), lambda b: (b, 0, 0)),    # newx (per-batch)
            pl.BlockSpec((B, 2, NFB), lambda b: (0, 0, 0)),    # all partial stats
            pl.BlockSpec((1, NFB), lambda b: (0, 0)),          # gamma
            pl.BlockSpec((1, NFB), lambda b: (0, 0)),          # beta
        ],
        out_specs=pl.BlockSpec((1, M, NFB), lambda b: (b, 0, 0)),
        compiler_params=pltpu.CompilerParams(
            dimension_semantics=("parallel",),
            vmem_limit_bytes=vmem_limit),
        input_output_aliases=alias,
        cost_estimate=pl.CostEstimate(flops=flops2, transcendentals=NFB,
                                      bytes_accessed=bytes2),
    )(newx, stats, gamma2d, beta2d)
    return out.reshape(B, T, N, NFB)


def reference(x, theta_w, phi_w, g_w, w_w, gamma, beta, eps=1e-5):
    """Pure-JAX vectorized equivalent of the PyTorch double loop."""
    B, T, N, NFB = x.shape
    hi = jax.lax.Precision.HIGHEST
    th = jnp.einsum('btnf,lf->btnl', x, theta_w, precision=hi)
    ph = jnp.einsum('btnf,lf->btnl', x, phi_w, precision=hi)
    gg = jnp.einsum('btnf,lf->btnl', x, g_w, precision=hi)
    sw = jnp.einsum('bijl,bikl->bijk', th, ph, precision=hi)
    sp = jnp.einsum('bijk,bikl->bijl', sw, gg, precision=hi) / N
    tw = jnp.einsum('bijl,btjl->bijt', th, ph, precision=hi)
    tm = jnp.einsum('bijt,btjl->bijl', tw, gg, precision=hi) / T
    st = (sp + tm) / (T + N)
    newx = jnp.einsum('btnl,fl->btnf', st, w_w, precision=hi) + x
    mean = jnp.mean(newx, axis=(0, 1, 2), keepdims=True)
    var = jnp.mean(jnp.square(newx - mean), axis=(0, 1, 2), keepdims=True)
    return (newx - mean) * jax.lax.rsqrt(var + eps) * gamma + beta


if __name__ == "__main__":
    key = jax.random.PRNGKey(0)
    B, T, N, NFB = 2, 4, 6, 32            # x: [B, T, N, NFB]
    L = NFB // 2                           # latent_dim

    ks = jax.random.split(key, 5)
    x = jax.random.normal(ks[0], (B, T, N, NFB), dtype=jnp.float32)
    # kaiming_normal_ (fan_in, gain=sqrt(2)): std = sqrt(2 / fan_in)
    theta_w = jax.random.normal(ks[1], (L, NFB), jnp.float32) * jnp.sqrt(2.0 / NFB)
    phi_w = jax.random.normal(ks[2], (L, NFB), jnp.float32) * jnp.sqrt(2.0 / NFB)
    g_w = jax.random.normal(ks[3], (L, NFB), jnp.float32) * jnp.sqrt(2.0 / NFB)
    w_w = jax.random.normal(ks[4], (NFB, L), jnp.float32) * jnp.sqrt(2.0 / L)
    gamma = jnp.ones((NFB,), jnp.float32)   # BatchNorm2d weight init
    beta = jnp.zeros((NFB,), jnp.float32)   # BatchNorm2d bias init

    out = cross_infer_block(x, theta_w, phi_w, g_w, w_w, gamma, beta)
    out = jax.block_until_ready(out)

    ref = reference(x, theta_w, phi_w, g_w, w_w, gamma, beta)
    assert out.shape == (B, T, N, NFB), out.shape
    err = float(np.max(np.abs(np.asarray(out) - np.asarray(ref))))
    if err > 5e-2:
        raise AssertionError(f"kernel/reference mismatch: max abs err = {err}")
    print("KERNEL_OK")
</pallas_src>

<mosaic_0001>
module attributes {stable_mosaic.version = 11 : i64} {
  func.func @_cross_infer_kernel(%arg0: i32, %arg1: memref<1x24x32xf32, #tpu.memory_space<vmem>>, %arg2: memref<32x16xf32, #tpu.memory_space<vmem>>, %arg3: memref<32x16xf32, #tpu.memory_space<vmem>>, %arg4: memref<32x16xf32, #tpu.memory_space<vmem>>, %arg5: memref<16x32xf32, #tpu.memory_space<vmem>>, %arg6: memref<24x24xf32, #tpu.memory_space<vmem>>, %arg7: memref<1x24x32xf32, #tpu.memory_space<vmem>>, %arg8: memref<1x2x32xf32, #tpu.memory_space<vmem>>) attributes {dimension_semantics = [#tpu.dimension_semantics<parallel>], iteration_bounds = array<i64: 2>, scalar_prefetch = 0 : i64, scratch_operands = 0 : i64, tpu.core_type = #tpu.core_type<tc>, window_params = [{transform_indices = @transform_0, window_bounds = array<i64: 1, 24, 32>}, {pipeline_mode = #tpu.pipeline_mode<synchronous>, transform_indices = @transform_1, window_bounds = array<i64: 32, 16>}, {pipeline_mode = #tpu.pipeline_mode<synchronous>, transform_indices = @transform_2, window_bounds = array<i64: 32, 16>}, {pipeline_mode = #tpu.pipeline_mode<synchronous>, transform_indices = @transform_3, window_bounds = array<i64: 32, 16>}, {pipeline_mode = #tpu.pipeline_mode<synchronous>, transform_indices = @transform_4, window_bounds = array<i64: 16, 32>}, {pipeline_mode = #tpu.pipeline_mode<synchronous>, transform_indices = @transform_5, window_bounds = array<i64: 24, 24>}, {transform_indices = @transform_6, window_bounds = array<i64: 1, 24, 32>}, {transform_indices = @transform_7, window_bounds = array<i64: 1, 2, 32>}]} {
    %c0 = arith.constant 0 : index
    %c0_0 = arith.constant 0 : index
    %c0_1 = arith.constant 0 : index
    %0 = vector.load %arg1[%c0, %c0_0, %c0_1] : memref<1x24x32xf32, #tpu.memory_space<vmem>>, vector<1x24x32xf32>
    %1 = vector.shape_cast %0 : vector<1x24x32xf32> to vector<24x32xf32>
    %c0_2 = arith.constant 0 : index
    %c0_3 = arith.constant 0 : index
    %2 = vector.load %arg2[%c0_2, %c0_3] : memref<32x16xf32, #tpu.memory_space<vmem>>, vector<32x16xf32>
    %cst = arith.constant dense<0.000000e+00> : vector<24x16xf32>
    %3 = tpu.matmul %1, %2, %cst {dimension_numbers = #tpu.dot_dimension_numbers<[1], [0], [0], [1], [0, 0, 1, 1], [], []>} : vector<24x32xf32>, vector<32x16xf32>, vector<24x16xf32> -> vector<24x16xf32>
    %c0_4 = arith.constant 0 : index
    %c0_5 = arith.constant 0 : index
    %4 = vector.load %arg3[%c0_4, %c0_5] : memref<32x16xf32, #tpu.memory_space<vmem>>, vector<32x16xf32>
    %cst_6 = arith.constant dense<0.000000e+00> : vector<24x16xf32>
    %5 = tpu.matmul %1, %4, %cst_6 {dimension_numbers = #tpu.dot_dimension_numbers<[1], [0], [0], [1], [0, 0, 1, 1], [], []>} : vector<24x32xf32>, vector<32x16xf32>, vector<24x16xf32> -> vector<24x16xf32>
    %c0_7 = arith.constant 0 : index
    %c0_8 = arith.constant 0 : index
    %6 = vector.load %arg4[%c0_7, %c0_8] : memref<32x16xf32, #tpu.memory_space<vmem>>, vector<32x16xf32>
    %cst_9 = arith.constant dense<0.000000e+00> : vector<24x16xf32>
    %7 = tpu.matmul %1, %6, %cst_9 {dimension_numbers = #tpu.dot_dimension_numbers<[1], [0], [0], [1], [0, 0, 1, 1], [], []>} : vector<24x32xf32>, vector<32x16xf32>, vector<24x16xf32> -> vector<24x16xf32>
    %cst_10 = arith.constant dense<0.000000e+00> : vector<24x24xf32>
    %8 = tpu.matmul %3, %5, %cst_10 {dimension_numbers = #tpu.dot_dimension_numbers<[1], [1], [0], [0], [0, 0, 1, 0], [], []>} : vector<24x16xf32>, vector<24x16xf32>, vector<24x24xf32> -> vector<24x24xf32>
    %c0_11 = arith.constant 0 : index
    %c0_12 = arith.constant 0 : index
    %9 = vector.load %arg6[%c0_11, %c0_12] : memref<24x24xf32, #tpu.memory_space<vmem>>, vector<24x24xf32>
    %10 = arith.mulf %8, %9 : vector<24x24xf32>
    %cst_13 = arith.constant dense<0.000000e+00> : vector<24x16xf32>
    %11 = tpu.matmul %10, %7, %cst_13 {dimension_numbers = #tpu.dot_dimension_numbers<[1], [0], [0], [1], [0, 0, 1, 1], [], []>} : vector<24x24xf32>, vector<24x16xf32>, vector<24x16xf32> -> vector<24x16xf32>
    %c0_14 = arith.constant 0 : index
    %c0_15 = arith.constant 0 : index
    %12 = vector.load %arg5[%c0_14, %c0_15] : memref<16x32xf32, #tpu.memory_space<vmem>>, vector<16x32xf32>
    %cst_16 = arith.constant dense<0.000000e+00> : vector<24x32xf32>
    %13 = tpu.matmul %11, %12, %cst_16 {dimension_numbers = #tpu.dot_dimension_numbers<[1], [0], [0], [1], [0, 0, 1, 1], [], []>} : vector<24x16xf32>, vector<16x32xf32>, vector<24x32xf32> -> vector<24x32xf32>
    %14 = arith.addf %13, %1 : vector<24x32xf32>
    %c0_17 = arith.constant 0 : index
    %c0_18 = arith.constant 0 : index
    %c0_19 = arith.constant 0 : index
    %15 = vector.load %arg7[%c0_17, %c0_18, %c0_19] : memref<1x24x32xf32, #tpu.memory_space<vmem>>, vector<1x24x32xf32>
    %16 = vector.shape_cast %15 : vector<1x24x32xf32> to vector<24x32xf32>
    %17 = vector.shape_cast %14 : vector<24x32xf32> to vector<1x24x32xf32>
    tpu.vector_store %arg7[%c0_17, %c0_18, %c0_19], %17 {strides = array<i32>} : memref<1x24x32xf32, #tpu.memory_space<vmem>>, vector<1x24x32xf32>,
    %cst_20 = arith.constant dense<0.000000e+00> : vector<32xf32>
    %18 = vector.multi_reduction <add>, %14, %cst_20 [0] : vector<24x32xf32> to vector<32xf32>
    %19 = vector.shape_cast %18 : vector<32xf32> to vector<1x32xf32>
    %20 = arith.mulf %14, %14 : vector<24x32xf32>
    %cst_21 = arith.constant dense<0.000000e+00> : vector<32xf32>
    %21 = vector.multi_reduction <add>, %20, %cst_21 [0] : vector<24x32xf32> to vector<32xf32>
    %22 = vector.shape_cast %21 : vector<32xf32> to vector<1x32xf32>
    %23 = tpu.concatenate %19, %22 in 0 : vector<1x32xf32>, vector<1x32xf32> -> vector<2x32xf32>
    %c0_22 = arith.constant 0 : index
    %c0_23 = arith.constant 0 : index
    %c0_24 = arith.constant 0 : index
    %24 = vector.load %arg8[%c0_22, %c0_23, %c0_24] : memref<1x2x32xf32, #tpu.memory_space<vmem>>, vector<1x2x32xf32>
    %25 = vector.shape_cast %24 : vector<1x2x32xf32> to vector<2x32xf32>
    %26 = vector.shape_cast %23 : vector<2x32xf32> to vector<1x2x32xf32>
    tpu.vector_store %arg8[%c0_22, %c0_23, %c0_24], %26 {strides = array<i32>} : memref<1x2x32xf32, #tpu.memory_space<vmem>>, vector<1x2x32xf32>,
    return
  }
  func.func @transform_0(%arg0: i32) -> (i32, i32, i32) {
    %c0_i32 = arith.constant 0 : i32
    %c0_i32_0 = arith.constant 0 : i32
    %c0_i32_1 = arith.constant 0 : i32
    return %arg0, %c0_i32, %c0_i32_0 : i32, i32, i32
  }
  func.func @transform_1(%arg0: i32) -> (i32, i32) {
    %c0_i32 = arith.constant 0 : i32
    %c0_i32_0 = arith.constant 0 : i32
    %c0_i32_1 = arith.constant 0 : i32
    return %c0_i32, %c0_i32_0 : i32, i32
  }
  func.func @transform_2(%arg0: i32) -> (i32, i32) {
    %c0_i32 = arith.constant 0 : i32
    %c0_i32_0 = arith.constant 0 : i32
    %c0_i32_1 = arith.constant 0 : i32
    return %c0_i32, %c0_i32_0 : i32, i32
  }
  func.func @transform_3(%arg0: i32) -> (i32, i32) {
    %c0_i32 = arith.constant 0 : i32
    %c0_i32_0 = arith.constant 0 : i32
    %c0_i32_1 = arith.constant 0 : i32
    return %c0_i32, %c0_i32_0 : i32, i32
  }
  func.func @transform_4(%arg0: i32) -> (i32, i32) {
    %c0_i32 = arith.constant 0 : i32
    %c0_i32_0 = arith.constant 0 : i32
    %c0_i32_1 = arith.constant 0 : i32
    return %c0_i32, %c0_i32_0 : i32, i32
  }
  func.func @transform_5(%arg0: i32) -> (i32, i32) {
    %c0_i32 = arith.constant 0 : i32
    %c0_i32_0 = arith.constant 0 : i32
    %c0_i32_1 = arith.constant 0 : i32
    return %c0_i32, %c0_i32_0 : i32, i32
  }
  func.func @transform_6(%arg0: i32) -> (i32, i32, i32) {
    %c0_i32 = arith.constant 0 : i32
    %c0_i32_0 = arith.constant 0 : i32
    %c0_i32_1 = arith.constant 0 : i32
    return %arg0, %c0_i32, %c0_i32_0 : i32, i32, i32
  }
  func.func @transform_7(%arg0: i32) -> (i32, i32, i32) {
    %c0_i32 = arith.constant 0 : i32
    %c0_i32_0 = arith.constant 0 : i32
    %c0_i32_1 = arith.constant 0 : i32
    return %arg0, %c0_i32, %c0_i32_0 : i32, i32, i32
  }
}

module attributes {stable_mosaic.version = 11 : i64} {
  func.func @_bn_apply_kernel(%arg0: i32, %arg1: memref<1x24x32xf32, #tpu.memory_space<vmem>>, %arg2: memref<2x2x32xf32, #tpu.memory_space<vmem>>, %arg3: memref<1x32xf32, #tpu.memory_space<vmem>>, %arg4: memref<1x32xf32, #tpu.memory_space<vmem>>, %arg5: memref<1x24x32xf32, #tpu.memory_space<vmem>>) attributes {dimension_semantics = [#tpu.dimension_semantics<parallel>], iteration_bounds = array<i64: 2>, scalar_prefetch = 0 : i64, scratch_operands = 0 : i64, tpu.core_type = #tpu.core_type<tc>, window_params = [{transform_indices = @transform_0, window_bounds = array<i64: 1, 24, 32>}, {pipeline_mode = #tpu.pipeline_mode<synchronous>, transform_indices = @transform_1, window_bounds = array<i64: 2, 2, 32>}, {pipeline_mode = #tpu.pipeline_mode<synchronous>, transform_indices = @transform_2, window_bounds = array<i64: 1, 32>}, {pipeline_mode = #tpu.pipeline_mode<synchronous>, transform_indices = @transform_3, window_bounds = array<i64: 1, 32>}, {transform_indices = @transform_4, window_bounds = array<i64: 1, 24, 32>}]} {
    %c0 = arith.constant 0 : index
    %c0_0 = arith.constant 0 : index
    %c0_1 = arith.constant 0 : index
    %0 = vector.load %arg2[%c0, %c0_0, %c0_1] : memref<2x2x32xf32, #tpu.memory_space<vmem>>, vector<2x2x32xf32>
    %cst = arith.constant dense<0.000000e+00> : vector<2x32xf32>
    %1 = vector.multi_reduction <add>, %0, %cst [0] : vector<2x2x32xf32> to vector<2x32xf32>
    %2 = vector.extract_strided_slice %1 {offsets = [0, 0], sizes = [1, 32], strides = [1, 1]} : vector<2x32xf32> to vector<1x32xf32>
    %cst_2 = arith.constant 0.020833334 : f32
    %3 = vector.broadcast %cst_2 : f32 to vector<1x32xf32>
    %4 = arith.mulf %2, %3 : vector<1x32xf32>
    %5 = vector.extract_strided_slice %1 {offsets = [1, 0], sizes = [1, 32], strides = [1, 1]} : vector<2x32xf32> to vector<1x32xf32>
    %cst_3 = arith.constant 0.020833334 : f32
    %6 = vector.broadcast %cst_3 : f32 to vector<1x32xf32>
    %7 = arith.mulf %5, %6 : vector<1x32xf32>
    %8 = arith.mulf %4, %4 : vector<1x32xf32>
    %9 = arith.subf %7, %8 : vector<1x32xf32>
    %c0_4 = arith.constant 0 : index
    %c0_5 = arith.constant 0 : index
    %10 = vector.load %arg3[%c0_4, %c0_5] : memref<1x32xf32, #tpu.memory_space<vmem>>, vector<1x32xf32>
    %cst_6 = arith.constant 9.99999974E-6 : f32
    %11 = vector.broadcast %cst_6 : f32 to vector<1x32xf32>
    %12 = arith.addf %9, %11 : vector<1x32xf32>
    %13 = math.rsqrt %12 : vector<1x32xf32>
    %14 = arith.mulf %10, %13 : vector<1x32xf32>
    %c0_7 = arith.constant 0 : index
    %c0_8 = arith.constant 0 : index
    %15 = vector.load %arg4[%c0_7, %c0_8] : memref<1x32xf32, #tpu.memory_space<vmem>>, vector<1x32xf32>
    %16 = arith.mulf %4, %14 : vector<1x32xf32>
    %17 = arith.subf %15, %16 : vector<1x32xf32>
    %c0_9 = arith.constant 0 : index
    %c0_10 = arith.constant 0 : index
    %c0_11 = arith.constant 0 : index
    %18 = vector.load %arg1[%c0_9, %c0_10, %c0_11] : memref<1x24x32xf32, #tpu.memory_space<vmem>>, vector<1x24x32xf32>
    %19 = vector.shape_cast %18 : vector<1x24x32xf32> to vector<24x32xf32>
    %20 = vector.broadcast %14 : vector<1x32xf32> to vector<24x32xf32>
    %21 = arith.mulf %19, %20 : vector<24x32xf32>
    %22 = vector.broadcast %17 : vector<1x32xf32> to vector<24x32xf32>
    %23 = arith.addf %21, %22 : vector<24x32xf32>
    %c0_12 = arith.constant 0 : index
    %c0_13 = arith.constant 0 : index
    %c0_14 = arith.constant 0 : index
    %24 = vector.load %arg5[%c0_12, %c0_13, %c0_14] : memref<1x24x32xf32, #tpu.memory_space<vmem>>, vector<1x24x32xf32>
    %25 = vector.shape_cast %24 : vector<1x24x32xf32> to vector<24x32xf32>
    %26 = vector.shape_cast %23 : vector<24x32xf32> to vector<1x24x32xf32>
    tpu.vector_store %arg5[%c0_12, %c0_13, %c0_14], %26 {strides = array<i32>} : memref<1x24x32xf32, #tpu.memory_space<vmem>>, vector<1x24x32xf32>,
    return
  }
  func.func @transform_0(%arg0: i32) -> (i32, i32, i32) {
    %c0_i32 = arith.constant 0 : i32
    %c0_i32_0 = arith.constant 0 : i32
    %c0_i32_1 = arith.constant 0 : i32
    return %arg0, %c0_i32, %c0_i32_0 : i32, i32, i32
  }
  func.func @transform_1(%arg0: i32) -> (i32, i32, i32) {
    %c0_i32 = arith.constant 0 : i32
    %c0_i32_0 = arith.constant 0 : i32
    %c0_i32_1 = arith.constant 0 : i32
    %c0_i32_2 = arith.constant 0 : i32
    return %c0_i32, %c0_i32_0, %c0_i32_1 : i32, i32, i32
  }
  func.func @transform_2(%arg0: i32) -> (i32, i32) {
    %c0_i32 = arith.constant 0 : i32
    %c0_i32_0 = arith.constant 0 : i32
    %c0_i32_1 = arith.constant 0 : i32
    return %c0_i32, %c0_i32_0 : i32, i32
  }
  func.func @transform_3(%arg0: i32) -> (i32, i32) {
    %c0_i32 = arith.constant 0 : i32
    %c0_i32_0 = arith.constant 0 : i32
    %c0_i32_1 = arith.constant 0 : i32
    return %c0_i32, %c0_i32_0 : i32, i32
  }
  func.func @transform_4(%arg0: i32) -> (i32, i32, i32) {
    %c0_i32 = arith.constant 0 : i32
    %c0_i32_0 = arith.constant 0 : i32
    %c0_i32_1 = arith.constant 0 : i32
    return %arg0, %c0_i32, %c0_i32_0 : i32, i32, i32
  }
}

</mosaic_0001>

<bundles_post_ra>
// kernel: cross_infer_block.2
= control target key start
LH: loop header
LB: loop body
LE: loop exit
PB: predicated region body
PF: predicated region fallthrough
CT: control target
= control target key end

     0   :  { %s731_s24 = smov 0   ;;  %s855_s0 = inlined_call_operand.vmem [shape: f32[2,24,32], index: 0, kind: input, shape index: {}]   ;;  %s856_s1 = inlined_call_operand.vmem [shape: f32[32,16], index: 1, kind: input, shape index: {}]   ;;  %s857_s2 = inlined_call_operand.vmem [shape: f32[32,16], index: 2, kind: input, shape index: {}]   ;;  %s858_s3 = inlined_call_operand.vmem [shape: f32[32,16], index: 3, kind: input, shape index: {}]   ;;  %s859_s4 = inlined_call_operand.vmem [shape: f32[16,32], index: 4, kind: input, shape index: {}]   ;;  %s860_s5 = inlined_call_operand.vmem [shape: f32[24,24], index: 5, kind: input, shape index: {}]   ;;  %s861_s6 = inlined_call_operand.vmem [shape: f32[2,24,32], index: 6, kind: output, shape index: {0}]   ;;  %s862_s7 = inlined_call_operand.vmem [shape: f32[2,2,32], index: 7, kind: output, shape index: {1}]  }
   0x1 LB: > { %s635_s25 = sadd.s32 4294967295, %s689_s24   ;;  %p639_p0 = scmp.ge.s32.totalorder %s689_s24, 1  ;;  %s689_s24 = sphi %s731_s24, %s18_s24  }
   0x2   : > { %p240_p1 = scmp.lt.s32.totalorder %s689_s24, 3 }
   0x4   : > { %p241_p2 = pnand %p639_p0, %p240_p1 }
   0x5   : > { %p276_p3 = scmp.lt.s32.totalorder (!%p241_p2), %s635_s25, 1 }
   0x6   : > { %244 = sbr.rel (%p241_p2) target bundleno = 593 (0x251), region = 44 }
   0xb   : > { %v336_v0 = vld [vmem:[%s857_s2 + $0x18] sm:$0xff]  ;;  %v335_v1 = vld [vmem:[%s857_s2 + $0x10] sm:$0xff]  ;;  %v334_v4 = vld [vmem:[%s857_s2 + $0x8] sm:$0xff]  ;;  %s864_s25 = smov (!%p276_p3, %s635_s25), 1  ;;  %vm297_vm0 = vcmask 261120   ;;  %vm393_vm1 = vcmask 130048  }
   0xc   : > { %670 = vmatpush.msra.mxu3 %v336_v0  ;;  %349 = vmatpush.msra.mxu1 %v336_v0  ;;  %v296_v2 = vld [vmem:[%s856_s1 + $0x18] sm:$0xff]  ;;  %v295_v3 = vld [vmem:[%s856_s1 + $0x10] sm:$0xff]  ;;  %v294_v5 = vld [vmem:[%s856_s1 + $0x8] sm:$0xff]  ;;  %s674_s17 = smul.u32 24, %s864_s25  ;;  %vm444_vm2 = vcmask 195584   ;;  %vm545_vm3 = vcmask 1040384  }
   0xd   : > { %319 = vmatpush.msra.mxu0 %v296_v2  ;;  %666 = vmatpush.msra.mxu2 %v296_v2  ;;  %v333_v6 = vld [vmem:[%s857_s2] sm:$0xff]  ;;  %v366_v10 = vld [vmem:[%s858_s3 + $0x18] sm:$0xff]  ;;  %v365_v11 = vld [vmem:[%s858_s3 + $0x10] sm:$0xff]  ;;  %vm547_vm4 = vcmask 254976  }
   0xe   : > { %671 = vmatpush.msra.mxu3 %v335_v1  ;;  %350 = vmatpush.msra.mxu1 %v335_v1  ;;  %s280_s20 = scalar_lea.vmem %s855_s0, %s674_s17  ;;  %v293_v7 = vld [vmem:[%s856_s1] sm:$0xff]  ;;  %v364_v12 = vld [vmem:[%s858_s3 + $0x8] sm:$0xff]  ;;  %v440_v31 = vld [vmem:[%s860_s5 + $0x10] sm:$0xff]  ;;  %s285_s23 = scalar_lea.vmem %s861_s6, %s674_s17 }
   0xf   : > { %320 = vmatpush.msra.mxu0 %v295_v3  ;;  %667 = vmatpush.msra.mxu2 %v295_v3  ;;  %v771_v8 = vld [vmem:[%s280_s20 + $0x8] sm:$0xff]  ;;  %v773_v9 = vld [vmem:[%s280_s20] sm:$0xff]  ;;  %v792_v13 = vld [vmem:[%s280_s20 + $0x10] sm:$0xff]  ;;  %s642_s17 = sshll.u32 %s864_s25, 1 }
  0x10   : > { %672 = vmatpush.msra.mxu3 %v334_v4  ;;  %351 = vmatpush.msra.mxu1 %v334_v4  ;;  %v363_v14 = vld [vmem:[%s858_s3] sm:$0xff]  ;;  %v481_v24 = vld [vmem:[%s859_s4 + $0x8] sm:$0xff]  ;;  %s289_s28 = scalar_lea.vmem %s862_s7, %s642_s17 }
  0x11   : > { %321 = vmatpush.msra.mxu0 %v294_v5  ;;  %668 = vmatpush.msra.mxu2 %v294_v5  ;;  %v438_v25 = vld [vmem:[%s860_s5] sm:$0xff]  ;;  %v439_v28 = vld [vmem:[%s860_s5 + $0x8] sm:$0xff] }
  0x12   : > { %673 = vmatpush.msra.mxu3 %v333_v6  ;;  %352 = vmatpush.msra.mxu1 %v333_v6  ;;  %v480_v34 = vld [vmem:[%s859_s4] sm:$0xff] }
  0x13   : > { %647 = vmatmul.msk.f32.vlgmr.msra.gmra.mxu3 %vm297_vm0, %v771_v8  ;;  %646 = vmatmul.msk.f32.vlgmr.msra.gmra.mxu1 %vm297_vm0, %v773_v9 }
  0x14   : > { %322 = vmatpush.msra.mxu0 %v293_v7  ;;  %669 = vmatpush.msra.mxu2 %v293_v7 }
  0x15   : > { %643 = vmatmul.msk.f32.vlgmr.msra.gmra.mxu0 %vm297_vm0, %v773_v9  ;;  %644 = vmatmul.msk.f32.vlgmr.msra.gmra.mxu2 %vm297_vm0, %v771_v8 }
  0x16   : > { %379 = vmatpush.msrb.mxu2 %v366_v10  ;;  %505 = vmatpush.msrb.mxu1 %v481_v24 }
  0x18   : > { %380 = vmatpush.msrb.mxu2 %v365_v11  ;;  %506 = vmatpush.msrb.mxu1 %v480_v34 }
  0x1a   : > { %381 = vmatpush.msrb.mxu2 %v364_v12 }
  0x1b   : > { %648 = vmatmul.msk.f32.gmra.mxu3 %vm297_vm0, %v792_v13 }
  0x1c   : > { %382 = vmatpush.msrb.mxu2 %v363_v14 }
  0x1d   : > { %645 = vmatmul.msk.f32.gmra.mxu2 %vm297_vm0, %v792_v13 }
  0x25   : > { %649 = vmatmul.msk.f32.vlgmr.msrb.gmra.mxu2 %vm297_vm0, %v773_v9 }
  0x2d   : > { %650 = vmatmul.msk.f32.gmra.mxu2 %vm297_vm0, %v771_v8 }
  0x35   : > { %651 = vmatmul.msk.f32.gmra.mxu2 %vm297_vm0, %v792_v13 }
  0x90   : > { %v354_v19 = vpop.f32.mrf.mxu1 }
  0x92   : > { %v324_v20 = vpop.f32.mrf.mxu0 }
  0x96   : > { %v357_v15 = vpop.f32.mrf.mxu3 }
  0x98   : > { %v327_v16 = vpop.f32.mrf.mxu2 }
  0x9e   : > { %v360_v17 = vpop.f32.mrf.mxu3 }
  0x9f   : > { %652 = vmatpush.xpose.msk.msrb.mxu3 %vm393_vm1, %v360_v17 }
  0xa0   : > { %v330_v18 = vpop.f32.mrf.mxu2 }
  0xa3   : > { %653 = vmatpush.xpose.msk.msrb.mxu3 %vm393_vm1, %v357_v15 }
  0xa7   : > { %654 = vmatpush.xpose.msk.msrb.mxu3 %vm393_vm1, %v354_v19 }
  0xa8   : > { %v384_v21 = vpop.f32.mrf.mxu2 }
  0xaa   : > { %655 = vmatmul.msk.f32.vlgmr.msrb.gmra.mxu3 %vm393_vm1, %v324_v20 }
  0xb0   : > { %v387_v22 = vpop.f32.mrf.mxu2 }
  0xb2   : > { %656 = vmatmul.msk.f32.gmra.mxu3 %vm393_vm1, %v327_v16 }
  0xb8   : > { %v390_v23 = vpop.f32.mrf.mxu2 }
  0xb9   : > { %467 = vmatpush.msrb.mxu0 %v390_v23 }
  0xba   : > { %657 = vmatmul.msk.f32.gmra.mxu3 %vm393_vm1, %v330_v18 }
  0xbb   : > { %468 = vmatpush.msrb.mxu0 %v387_v22 }
  0xbd   : > { %469 = vmatpush.msrb.mxu0 %v384_v21 }
 0x12d   : > { %v429_v26 = vpop.f32.mrf.mxu3 }
 0x12e   : > { %v441_v27 = vmul.f32 %v438_v25, %v429_v26 }
 0x130   : > { %658 = vmatmul.msk.f32.vlgmr.msrb.gmra.mxu0 %vm444_vm2, %v441_v27 }
 0x135   : > { %v432_v29 = vpop.f32.mrf.mxu3 }
 0x136   : > { %v442_v30 = vmul.f32 %v439_v28, %v432_v29 }
 0x138   : > { %659 = vmatmul.msk.f32.gmra.mxu0 %vm444_vm2, %v442_v30 }
 0x13d   : > { %v435_v32 = vpop.f32.mrf.mxu3 }
 0x13e   : > { %v443_v33 = vmul.f32 %v440_v31, %v435_v32 }
 0x140   : > { %660 = vmatmul.msk.f32.gmra.mxu0 %vm444_vm2, %v443_v33 }
 0x1ad   : > { %v471_v35 = vpop.f32.mrf.mxu0 }
 0x1ae   : > { %661 = vmatmul.msk.f32.vlgmr.msrb.gmra.mxu1 %vm393_vm1, %v471_v35 }
 0x1b5   : > { %v474_v36 = vpop.f32.mrf.mxu0 }
 0x1b6   : > { %662 = vmatmul.msk.f32.gmra.mxu1 %vm393_vm1, %v474_v36 }
 0x1bd   : > { %v477_v37 = vpop.f32.mrf.mxu0 }
 0x1be   : > { %663 = vmatmul.msk.f32.gmra.mxu1 %vm393_vm1, %v477_v37 }
 0x22b   : > { %v508_v38 = vpop.f32.mrf.mxu1 }
 0x22c   : > { %v509_v39 = vadd.f32 %v508_v38, %v773_v9 }
 0x22e   : > { %517 = vst.msk [vmem:[%s285_s23] sm:$0xff] %vm297_vm0, %v509_v39  ;;  %v531_v43 = vmul.f32 %v509_v39, %v509_v39  ;;  %v520_v46 = vsel %vm297_vm0, %v509_v39, 0.0 }
 0x230   : > { %v534_v50 = vsel %vm297_vm0, %v531_v43, 0.0 }
 0x233   : > { %v511_v40 = vpop.f32.mrf.mxu1 }
 0x234   : > { %v512_v41 = vadd.f32 %v511_v40, %v771_v8 }
 0x236   : > { %518 = vst.msk [vmem:[%s285_s23 + $0x8] sm:$0xff] %vm297_vm0, %v512_v41  ;;  %v532_v42 = vmul.f32 %v512_v41, %v512_v41  ;;  %v521_v44 = vsel %vm297_vm0, %v512_v41, 0.0 }
 0x237   : > { %v522_v49 = vadd.f32 %v521_v44, %v520_v46 }
 0x238   : > { %v535_v47 = vsel %vm297_vm0, %v532_v42, 0.0 }
 0x239   : > { %v536_v53 = vadd.f32 %v535_v47, %v534_v50 }
 0x23b   : > { %v514_v45 = vpop.f32.mrf.mxu1 }
 0x23c   : > { %v515_v48 = vadd.f32 %v514_v45, %v792_v13 }
 0x23e   : > { %519 = vst.msk [vmem:[%s285_s23 + $0x10] sm:$0xff] %vm297_vm0, %v515_v48  ;;  %v523_v51 = vsel %vm297_vm0, %v515_v48, 0.0  ;;  %v533_v52 = vmul.f32 %v515_v48, %v515_v48 }
 0x23f   : > { %v524_v54 = vadd.f32 %v523_v51, %v522_v49 }
 0x240   : > { %v537_v55 = vsel %vm297_vm0, %v533_v52, 0.0 }
 0x241   : > { %v525_v56 = vrot.slane %v524_v54, 4  ;;  %v538_v57 = vadd.f32 %v537_v55, %v536_v53 }
 0x243   : > { %v526_v58 = vadd.f32 %v525_v56, %v524_v54  ;;  %v539_v59 = vrot.slane %v538_v57, 4 }
 0x245   : > { %v527_v60 = vrot.slane %v526_v58, 2  ;;  %v540_v61 = vadd.f32 %v539_v59, %v538_v57 }
 0x247   : > { %v528_v62 = vadd.f32 %v527_v60, %v526_v58  ;;  %v541_v63 = vrot.slane %v540_v61, 2 }
 0x249   : > { %v529_v0 = vrot.slane %v528_v62, 1  ;;  %v542_v1 = vadd.f32 %v541_v63, %v540_v61 }
 0x24b   : > { %v543_v2 = vrot.slane %v542_v1, 1  ;;  %v530_v3 = vadd.f32 %v529_v0, %v528_v62 }
 0x24d   : > { %v544_v4 = vadd.f32 %v543_v2, %v542_v1 }
 0x24f   : > { %v546_v5 = vsel %vm545_vm3, %v530_v3, %v544_v4 }
 0x250   : > { %548 = vst.msk [vmem:[%s289_s28] sm:$0x3] %vm547_vm4, %v546_v5 }
 0x251 PF: > { %s18_s24 = sadd.s32 1, %s689_s24  }
 0x252   : > { %p15_p4 = scmp.ge.s32.totalorder %s18_s24, 4  }
 0x254   :  { %17 = sbr.rel (!%p15_p4) target bundleno = 1 (0x1), region = 86 }

// kernel: cross_infer_block.3
= control target key start
LH: loop header
LB: loop body
LE: loop exit
PB: predicated region body
PF: predicated region fallthrough
CT: control target
= control target key end

     0   :  { %s358_s15 = smov 0   ;;  %s387_s0 = inlined_call_operand.vmem [shape: f32[2,24,32], index: 0, kind: input, shape index: {}, may-alias: {0,4}]   ;;  %s388_s1 = inlined_call_operand.vmem [shape: f32[2,2,32], index: 1, kind: input, shape index: {}]   ;;  %s389_s2 = inlined_call_operand.vmem [shape: f32[1,32], index: 2, kind: input, shape index: {}]   ;;  %s390_s3 = inlined_call_operand.vmem [shape: f32[1,32], index: 3, kind: input, shape index: {}]   ;;  %s391_s4 = inlined_call_operand.vmem [shape: f32[2,24,32], index: 4, kind: output, shape index: {}, may-alias: {0,4}]  }
   0x1 LB: > { %s305_s16 = sadd.s32 4294967295, %s331_s15   ;;  %p309_p0 = scmp.ge.s32.totalorder %s331_s15, 1  ;;  %s331_s15 = sphi %s358_s15, %s14_s15  }
   0x2   : > { %p162_p1 = scmp.lt.s32.totalorder %s331_s15, 3 }
   0x4   : > { %p163_p2 = pnand %p309_p0, %p162_p1 }
   0x5   : > { %p188_p3 = scmp.lt.s32.totalorder (!%p163_p2), %s305_s16, 1 }
   0x6   : > { %166 = sbr.rel (%p163_p2) target bundleno = 64 (0x40), region = 36 }
   0xb   : > { %v198_v0 = vld [vmem:[%s388_s1] sm:$0x3]  ;;  %v199_v1 = vld [vmem:[%s388_s1 + $0x2] sm:$0x3]  ;;  %vm200_vm0 = vcmask 254976   ;;  %s393_s16 = smov (!%p188_p3, %s305_s16), 1 }
   0xc   : > { %v201_v2 = vsel %vm200_vm0, %v198_v0, 0.0  ;;  %v202_v3 = vsel %vm200_vm0, %v199_v1, 0.0  ;;  %s314_s21 = smul.u32 24, %s393_s16  ;;  %v210_v17 = vld [vmem:[%s389_s2] sm:$0x1]  ;;  %vm246_vm4 = vcmask 261120  }
   0xd   : > { %v203_v4 = vadd.f32 %v202_v3, %v201_v2  ;;  %v228_v20 = vld [vmem:[%s390_s3] sm:$0x1] }
   0xe   : > { %s192_s26 = scalar_lea.vmem %s387_s0, %s314_s21  ;;  %s197_s5 = scalar_lea.vmem %s391_s4, %s314_s21 }
   0xf   : > { %v204_v5 = vmul.f32 0.020833334, %v203_v4  ;;  %v231_v23 = vld [vmem:[%s192_s26] sm:$0xff]  ;;  %v232_v24 = vld [vmem:[%s192_s26 + $0x8] sm:$0xff]  ;;  %v233_v25 = vld [vmem:[%s192_s26 + $0x10] sm:$0xff] }
  0x11   : > { %v205_v6 = vmul.f32 %v204_v5, %v204_v5 }
  0x13   : > { %v207_v7 = vrot.slane %v205_v6, 7 }
  0x15   : > { %v209_v8 = vsub.f32 %v204_v5, %v207_v7 }
  0x17   : > { %v211_v9 = vadd.f32 1e-05, %v209_v8 }
  0x19   : > { %323 = vrsqrt.f32 %v211_v9  ;;  %vm218_vm1 = vweird.f32 %v211_v9 }
  0x1f   : > { %v324_v10 = vpop.eup %323 }
  0x20   : > { %v213_v11 = vmul.f32 %v324_v10, %v211_v9  ;;  %vm219_vm2 = vweird.f32 %v324_v10 }
  0x21   : > { %vm220_vm3 = vmor %vm218_vm1, %vm219_vm2 }
  0x22   : > { %v214_v12 = vmul.f32 %v324_v10, %v213_v11 }
  0x24   : > { %v215_v13 = vmul.f32 0.5, %v214_v12 }
  0x26   : > { %v216_v14 = vsub.f32 1.5, %v215_v13 }
  0x28   : > { %v217_v15 = vmul.f32 %v324_v10, %v216_v14 }
  0x2a   : > { %v221_v16 = vsel %vm220_vm3, %v324_v10, %v217_v15 }
  0x2b   : > { %223 = vst [vmem:[#allocation1] sm:$0xff] %v221_v16 }
  0x32   : > { %v225_v18 = vld [vmem:[#allocation1 + $0x1] ss:$9 sm:$0xff] }
  0x33   : > { %v227_v19 = vmul.f32 %v225_v18, %v210_v17 }
  0x35   : > { %v229_v21 = vmul.f32 %v227_v19, %v204_v5  ;;  %v235_v22 = vperm.slane %v227_v19, 0 }
  0x37   : > { %v230_v26 = vsub.f32 %v228_v20, %v229_v21  ;;  %v237_v27 = vmul.f32 %v235_v22, %v231_v23  ;;  %v238_v28 = vmul.f32 %v235_v22, %v232_v24  ;;  %v239_v29 = vmul.f32 %v235_v22, %v233_v25 }
  0x39   : > { %v241_v30 = vperm.slane %v230_v26, 0 }
  0x3b   : > { %v243_v31 = vadd.f32 %v241_v30, %v237_v27  ;;  %v244_v32 = vadd.f32 %v241_v30, %v238_v28  ;;  %v245_v33 = vadd.f32 %v241_v30, %v239_v29 }
  0x3d   : > { %247 = vst.msk [vmem:[%s197_s5] sm:$0xff] %vm246_vm4, %v243_v31 }
  0x3e   : > { %248 = vst.msk [vmem:[%s197_s5 + $0x8] sm:$0xff] %vm246_vm4, %v244_v32 }
  0x3f   : > { %249 = vst.msk [vmem:[%s197_s5 + $0x10] sm:$0xff] %vm246_vm4, %v245_v33 }
  0x40 PF: > { %s14_s15 = sadd.s32 1, %s331_s15  }
  0x41   : > { %p11_p4 = scmp.ge.s32.totalorder %s14_s15, 4  }
  0x43   :  { %13 = sbr.rel (!%p11_p4) target bundleno = 1 (0x1), region = 67 }

</bundles_post_ra>
